<compile_context>
chip_gen: v7x
topology: tpu7x:2x2x1
jax: 0.10.0
libtpu: 0.0.40
codegen_flags: <defaults>
</compile_context>

<pallas_src>
import math

import jax
import jax.numpy as jnp
from jax.experimental import pallas as pl
from jax.experimental.pallas import tpu as pltpu

# ---- model hyper-parameters (small, consistent with the module) -------------
D_MODEL = 32
NUM_HEADS = 4
HEAD_DIM = D_MODEL // NUM_HEADS
BATCH = 2
SEQ = 8


def make_mha_kernel(batch, seq, n_heads, head_dim, d_model):
    """Build the fused MHA kernel with static shape parameters closed over."""
    scale = 1.0 / math.sqrt(head_dim)
    n_rows = batch * seq  # B*S

    def kernel(q_ref, k_ref, v_ref, wqkv_ref, bqkv_ref, wo_ref, bo_ref, o_ref):
        # q_ref/k_ref/v_ref : (B*S, D)   activations
        # wqkv_ref          : (3, D, D)  stacked [Wq; Wk; Wv], each [in, out]
        # bqkv_ref          : (3, 1, D)  stacked biases
        # wo_ref            : (D, D)     output projection, [in, out]
        # bo_ref            : (1, D)     output projection bias
        # o_ref             : (B*S, D)   output

        # Full-width projections: one (B*S, D) @ (D, D) matmul per stream,
        # then an outer-dim-only reshape to expose the batch axis.
        def project(x_ref, p):
            y = jnp.dot(x_ref[...], wqkv_ref[p],
                        preferred_element_type=jnp.float32) + bqkv_ref[p]
            return y.reshape(batch, seq, d_model)            # (B, S, D)

        qp = project(q_ref, 0)
        kp = project(k_ref, 1)
        vp = project(v_ref, 2)

        wo = wo_ref[...]                                      # (D, D)
        acc = jnp.zeros((n_rows, d_model), jnp.float32)       # (B*S, D)

        # Static unroll over heads (H is small).  Per-head Q/K/V are static
        # lane slices of the projected activations; the head-concat followed
        # by out_linear is expressed as per-head (B*S, hd) @ (hd, D) matmuls
        # accumulated in f32 (mathematically identical, no concat needed).
        for h in range(n_heads):
            lo = h * head_dim
            qh = qp[:, :, lo:lo + head_dim]                   # (B, S, hd)
            kh = kp[:, :, lo:lo + head_dim]
            vh = vp[:, :, lo:lo + head_dim]

            s = jnp.einsum("bqd,bkd->bqk", qh, kh,
                           preferred_element_type=jnp.float32) * scale
            s = s - jnp.max(s, axis=-1, keepdims=True)
            p = jnp.exp(s)
            p = p / jnp.sum(p, axis=-1, keepdims=True)        # exact softmax

            ctx = jnp.einsum("bqk,bkd->bqd", p, vh,
                             preferred_element_type=jnp.float32)  # (B, S, hd)
            acc = acc + jnp.dot(ctx.reshape(n_rows, head_dim),
                                wo[lo:lo + head_dim, :],
                                preferred_element_type=jnp.float32)

        o_ref[...] = (acc + bo_ref[...]).astype(o_ref.dtype)

    return kernel


def pack_params(params):
    """Pack weights ONCE (outside the per-forward-call path)."""
    return {
        "wqkv": jnp.stack([params["wq"], params["wk"], params["wv"]], axis=0),
        "bqkv": jnp.stack([params["bq"], params["bk"], params["bv"]], axis=0),
        "wo": params["wo"],
        "bo": params["bo"],
    }


def multi_head_attention(q, k, v, packed):
    """q, k, v: [B, S, D] float32.  packed: output of pack_params (built once)."""
    B, S, D = q.shape
    H = NUM_HEADS
    hd = D // H
    BS = B * S

    kernel = make_mha_kernel(B, S, H, hd, D)

    out2d = pl.pallas_call(
        kernel,
        out_shape=jax.ShapeDtypeStruct((BS, D), q.dtype),
        grid=(1,),   # single step: whole problem fits one block
        in_specs=[
            pl.BlockSpec((BS, D), lambda i: (0, 0)),
            pl.BlockSpec((BS, D), lambda i: (0, 0)),
            pl.BlockSpec((BS, D), lambda i: (0, 0)),
            pl.BlockSpec((3, D, D), lambda i: (0, 0, 0)),
            pl.BlockSpec((3, 1, D), lambda i: (0, 0, 0)),
            pl.BlockSpec((D, D), lambda i: (0, 0)),
            pl.BlockSpec((1, D), lambda i: (0, 0)),
        ],
        out_specs=pl.BlockSpec((BS, D), lambda i: (0, 0)),
        compiler_params=pltpu.CompilerParams(
            dimension_semantics=("arbitrary",)),
    )(q.reshape(BS, D), k.reshape(BS, D), v.reshape(BS, D),
      packed["wqkv"], packed["bqkv"], packed["wo"], packed["bo"])

    return out2d.reshape(B, S, D)


def reference_mha(q, k, v, params):
    """Pure-JAX reference mirroring the PyTorch forward (mask=None)."""
    B, S, D = q.shape
    H, hd = NUM_HEADS, HEAD_DIM

    def lin(x, w, b):
        return x @ w + b[0]

    Q = lin(q, params["wq"], params["bq"]).reshape(B, S, H, hd).transpose(0, 2, 1, 3)
    K = lin(k, params["wk"], params["bk"]).reshape(B, S, H, hd).transpose(0, 2, 1, 3)
    V = lin(v, params["wv"], params["bv"]).reshape(B, S, H, hd).transpose(0, 2, 1, 3)

    scores = jnp.einsum("bhqd,bhkd->bhqk", Q, K) / math.sqrt(hd)
    attn = jax.nn.softmax(scores, axis=-1)
    out = jnp.einsum("bhqk,bhkd->bhqd", attn, V)
    out = out.transpose(0, 2, 1, 3).reshape(B, S, D)
    return lin(out, params["wo"], params["bo"])


def init_params(key, d_model):
    """Deterministic parameter init. Weights already transposed to [in, out]."""
    keys = jax.random.split(key, 8)
    scale = 0.02

    def w(k):
        return jax.random.normal(k, (d_model, d_model), jnp.float32) * scale

    def b(k):
        return jax.random.normal(k, (1, d_model), jnp.float32) * scale

    return {
        "wq": w(keys[0]), "bq": b(keys[1]),
        "wk": w(keys[2]), "bk": b(keys[3]),
        "wv": w(keys[4]), "bv": b(keys[5]),
        "wo": w(keys[6]), "bo": b(keys[7]),
    }


if __name__ == "__main__":
    key = jax.random.PRNGKey(0)
    k_param, k_q, k_k, k_v = jax.random.split(key, 4)

    params = init_params(k_param, D_MODEL)
    packed = pack_params(params)   # packed once, reused for every forward call

    q = jax.random.normal(k_q, (BATCH, SEQ, D_MODEL), jnp.float32)
    k = jax.random.normal(k_k, (BATCH, SEQ, D_MODEL), jnp.float32)
    v = jax.random.normal(k_v, (BATCH, SEQ, D_MODEL), jnp.float32)

    out = jax.block_until_ready(multi_head_attention(q, k, v, packed))
    ref = jax.block_until_ready(reference_mha(q, k, v, params))

    assert out.shape == (BATCH, SEQ, D_MODEL)
    assert jnp.allclose(out, ref, atol=1e-5, rtol=1e-4), "mismatch vs reference"

    print("KERNEL_OK")
</pallas_src>

<mosaic_0001>
module attributes {stable_mosaic.version = 11 : i64} {
  func.func @kernel(%arg0: i32, %arg1: memref<16x32xf32, #tpu.memory_space<vmem>>, %arg2: memref<16x32xf32, #tpu.memory_space<vmem>>, %arg3: memref<16x32xf32, #tpu.memory_space<vmem>>, %arg4: memref<3x32x32xf32, #tpu.memory_space<vmem>>, %arg5: memref<3x1x32xf32, #tpu.memory_space<vmem>>, %arg6: memref<32x32xf32, #tpu.memory_space<vmem>>, %arg7: memref<1x32xf32, #tpu.memory_space<vmem>>, %arg8: memref<16x32xf32, #tpu.memory_space<vmem>>) attributes {dimension_semantics = [#tpu.dimension_semantics<arbitrary>], iteration_bounds = array<i64: 1>, scalar_prefetch = 0 : i64, scratch_operands = 0 : i64, tpu.core_type = #tpu.core_type<tc>, window_params = [{pipeline_mode = #tpu.pipeline_mode<synchronous>, transform_indices = @transform_0, window_bounds = array<i64: 16, 32>}, {pipeline_mode = #tpu.pipeline_mode<synchronous>, transform_indices = @transform_1, window_bounds = array<i64: 16, 32>}, {pipeline_mode = #tpu.pipeline_mode<synchronous>, transform_indices = @transform_2, window_bounds = array<i64: 16, 32>}, {pipeline_mode = #tpu.pipeline_mode<synchronous>, transform_indices = @transform_3, window_bounds = array<i64: 3, 32, 32>}, {pipeline_mode = #tpu.pipeline_mode<synchronous>, transform_indices = @transform_4, window_bounds = array<i64: 3, 1, 32>}, {pipeline_mode = #tpu.pipeline_mode<synchronous>, transform_indices = @transform_5, window_bounds = array<i64: 32, 32>}, {pipeline_mode = #tpu.pipeline_mode<synchronous>, transform_indices = @transform_6, window_bounds = array<i64: 1, 32>}, {pipeline_mode = #tpu.pipeline_mode<synchronous>, transform_indices = @transform_7, window_bounds = array<i64: 16, 32>}]} {
    %c0 = arith.constant 0 : index
    %c0_0 = arith.constant 0 : index
    %0 = vector.load %arg1[%c0, %c0_0] : memref<16x32xf32, #tpu.memory_space<vmem>>, vector<16x32xf32>
    %c0_1 = arith.constant 0 : index
    %c0_2 = arith.constant 0 : index
    %c0_3 = arith.constant 0 : index
    %1 = vector.load %arg4[%c0_1, %c0_2, %c0_3] : memref<3x32x32xf32, #tpu.memory_space<vmem>>, vector<1x32x32xf32>
    %2 = vector.shape_cast %1 : vector<1x32x32xf32> to vector<32x32xf32>
    %cst = arith.constant dense<0.000000e+00> : vector<16x32xf32>
    %3 = tpu.matmul %0, %2, %cst {dimension_numbers = #tpu.dot_dimension_numbers<[1], [0], [0], [1], [0, 0, 1, 1], [], []>} : vector<16x32xf32>, vector<32x32xf32>, vector<16x32xf32> -> vector<16x32xf32>
    %c0_4 = arith.constant 0 : index
    %c0_5 = arith.constant 0 : index
    %c0_6 = arith.constant 0 : index
    %4 = vector.load %arg5[%c0_4, %c0_5, %c0_6] : memref<3x1x32xf32, #tpu.memory_space<vmem>>, vector<1x1x32xf32>
    %5 = vector.shape_cast %4 : vector<1x1x32xf32> to vector<1x32xf32>
    %6 = vector.broadcast %5 : vector<1x32xf32> to vector<16x32xf32>
    %7 = arith.addf %3, %6 : vector<16x32xf32>
    %8 = vector.shape_cast %7 : vector<16x32xf32> to vector<2x8x32xf32>
    %c0_7 = arith.constant 0 : index
    %c0_8 = arith.constant 0 : index
    %9 = vector.load %arg2[%c0_7, %c0_8] : memref<16x32xf32, #tpu.memory_space<vmem>>, vector<16x32xf32>
    %c1 = arith.constant 1 : index
    %c0_9 = arith.constant 0 : index
    %c0_10 = arith.constant 0 : index
    %10 = vector.load %arg4[%c1, %c0_9, %c0_10] : memref<3x32x32xf32, #tpu.memory_space<vmem>>, vector<1x32x32xf32>
    %11 = vector.shape_cast %10 : vector<1x32x32xf32> to vector<32x32xf32>
    %cst_11 = arith.constant dense<0.000000e+00> : vector<16x32xf32>
    %12 = tpu.matmul %9, %11, %cst_11 {dimension_numbers = #tpu.dot_dimension_numbers<[1], [0], [0], [1], [0, 0, 1, 1], [], []>} : vector<16x32xf32>, vector<32x32xf32>, vector<16x32xf32> -> vector<16x32xf32>
    %c1_12 = arith.constant 1 : index
    %c0_13 = arith.constant 0 : index
    %c0_14 = arith.constant 0 : index
    %13 = vector.load %arg5[%c1_12, %c0_13, %c0_14] : memref<3x1x32xf32, #tpu.memory_space<vmem>>, vector<1x1x32xf32>
    %14 = vector.shape_cast %13 : vector<1x1x32xf32> to vector<1x32xf32>
    %15 = vector.broadcast %14 : vector<1x32xf32> to vector<16x32xf32>
    %16 = arith.addf %12, %15 : vector<16x32xf32>
    %17 = vector.shape_cast %16 : vector<16x32xf32> to vector<2x8x32xf32>
    %c0_15 = arith.constant 0 : index
    %c0_16 = arith.constant 0 : index
    %18 = vector.load %arg3[%c0_15, %c0_16] : memref<16x32xf32, #tpu.memory_space<vmem>>, vector<16x32xf32>
    %c2 = arith.constant 2 : index
    %c0_17 = arith.constant 0 : index
    %c0_18 = arith.constant 0 : index
    %19 = vector.load %arg4[%c2, %c0_17, %c0_18] : memref<3x32x32xf32, #tpu.memory_space<vmem>>, vector<1x32x32xf32>
    %20 = vector.shape_cast %19 : vector<1x32x32xf32> to vector<32x32xf32>
    %cst_19 = arith.constant dense<0.000000e+00> : vector<16x32xf32>
    %21 = tpu.matmul %18, %20, %cst_19 {dimension_numbers = #tpu.dot_dimension_numbers<[1], [0], [0], [1], [0, 0, 1, 1], [], []>} : vector<16x32xf32>, vector<32x32xf32>, vector<16x32xf32> -> vector<16x32xf32>
    %c2_20 = arith.constant 2 : index
    %c0_21 = arith.constant 0 : index
    %c0_22 = arith.constant 0 : index
    %22 = vector.load %arg5[%c2_20, %c0_21, %c0_22] : memref<3x1x32xf32, #tpu.memory_space<vmem>>, vector<1x1x32xf32>
    %23 = vector.shape_cast %22 : vector<1x1x32xf32> to vector<1x32xf32>
    %24 = vector.broadcast %23 : vector<1x32xf32> to vector<16x32xf32>
    %25 = arith.addf %21, %24 : vector<16x32xf32>
    %26 = vector.shape_cast %25 : vector<16x32xf32> to vector<2x8x32xf32>
    %c0_23 = arith.constant 0 : index
    %c0_24 = arith.constant 0 : index
    %27 = vector.load %arg6[%c0_23, %c0_24] : memref<32x32xf32, #tpu.memory_space<vmem>>, vector<32x32xf32>
    %cst_25 = arith.constant 0.000000e+00 : f32
    %28 = vector.broadcast %cst_25 : f32 to vector<16x32xf32>
    %29 = vector.extract_strided_slice %8 {offsets = [0, 0, 0], sizes = [2, 8, 8], strides = [1, 1, 1]} : vector<2x8x32xf32> to vector<2x8x8xf32>
    %30 = vector.extract_strided_slice %17 {offsets = [0, 0, 0], sizes = [2, 8, 8], strides = [1, 1, 1]} : vector<2x8x32xf32> to vector<2x8x8xf32>
    %31 = vector.extract_strided_slice %26 {offsets = [0, 0, 0], sizes = [2, 8, 8], strides = [1, 1, 1]} : vector<2x8x32xf32> to vector<2x8x8xf32>
    "tpu.trace_start"() <{level = 10 : i32, message = "bqd,bkd->bqk"}> : () -> ()
    %cst_26 = arith.constant dense<0.000000e+00> : vector<2x8x8xf32>
    %32 = tpu.matmul %29, %30, %cst_26 {dimension_numbers = #tpu.dot_dimension_numbers<[2], [2], [1], [1], [0, 0, 0, 1, 1, 1], [0], [0]>} : vector<2x8x8xf32>, vector<2x8x8xf32>, vector<2x8x8xf32> -> vector<2x8x8xf32>
    "tpu.trace_stop"() : () -> ()
    %cst_27 = arith.constant 0.353553385 : f32
    %33 = vector.broadcast %cst_27 : f32 to vector<2x8x8xf32>
    %34 = arith.mulf %32, %33 : vector<2x8x8xf32>
    %cst_28 = arith.constant dense<0xFF800000> : vector<2x8xf32>
    %35 = vector.multi_reduction <maximumf>, %34, %cst_28 [2] : vector<2x8x8xf32> to vector<2x8xf32>
    %36 = vector.shape_cast %35 : vector<2x8xf32> to vector<2x8x1xf32>
    %37 = vector.broadcast %36 : vector<2x8x1xf32> to vector<2x8x8xf32>
    %38 = arith.subf %34, %37 : vector<2x8x8xf32>
    %39 = math.exp %38 : vector<2x8x8xf32>
    %cst_29 = arith.constant dense<0.000000e+00> : vector<2x8xf32>
    %40 = vector.multi_reduction <add>, %39, %cst_29 [2] : vector<2x8x8xf32> to vector<2x8xf32>
    %41 = vector.shape_cast %40 : vector<2x8xf32> to vector<2x8x1xf32>
    %42 = vector.broadcast %41 : vector<2x8x1xf32> to vector<2x8x8xf32>
    %43 = arith.divf %39, %42 : vector<2x8x8xf32>
    "tpu.trace_start"() <{level = 10 : i32, message = "bqk,bkd->bqd"}> : () -> ()
    %cst_30 = arith.constant dense<0.000000e+00> : vector<2x8x8xf32>
    %44 = tpu.matmul %43, %31, %cst_30 {dimension_numbers = #tpu.dot_dimension_numbers<[2], [1], [1], [2], [0, 0, 0, 1, 1, 2], [0], [0]>} : vector<2x8x8xf32>, vector<2x8x8xf32>, vector<2x8x8xf32> -> vector<2x8x8xf32>
    "tpu.trace_stop"() : () -> ()
    %45 = vector.shape_cast %44 : vector<2x8x8xf32> to vector<16x8xf32>
    %46 = vector.extract_strided_slice %27 {offsets = [0, 0], sizes = [8, 32], strides = [1, 1]} : vector<32x32xf32> to vector<8x32xf32>
    %cst_31 = arith.constant dense<0.000000e+00> : vector<16x32xf32>
    %47 = tpu.matmul %45, %46, %cst_31 {dimension_numbers = #tpu.dot_dimension_numbers<[1], [0], [0], [1], [0, 0, 1, 1], [], []>} : vector<16x8xf32>, vector<8x32xf32>, vector<16x32xf32> -> vector<16x32xf32>
    %48 = arith.addf %28, %47 : vector<16x32xf32>
    %49 = vector.extract_strided_slice %8 {offsets = [0, 0, 8], sizes = [2, 8, 8], strides = [1, 1, 1]} : vector<2x8x32xf32> to vector<2x8x8xf32>
    %50 = vector.extract_strided_slice %17 {offsets = [0, 0, 8], sizes = [2, 8, 8], strides = [1, 1, 1]} : vector<2x8x32xf32> to vector<2x8x8xf32>
    %51 = vector.extract_strided_slice %26 {offsets = [0, 0, 8], sizes = [2, 8, 8], strides = [1, 1, 1]} : vector<2x8x32xf32> to vector<2x8x8xf32>
    "tpu.trace_start"() <{level = 10 : i32, message = "bqd,bkd->bqk"}> : () -> ()
    %cst_32 = arith.constant dense<0.000000e+00> : vector<2x8x8xf32>
    %52 = tpu.matmul %49, %50, %cst_32 {dimension_numbers = #tpu.dot_dimension_numbers<[2], [2], [1], [1], [0, 0, 0, 1, 1, 1], [0], [0]>} : vector<2x8x8xf32>, vector<2x8x8xf32>, vector<2x8x8xf32> -> vector<2x8x8xf32>
    "tpu.trace_stop"() : () -> ()
    %cst_33 = arith.constant 0.353553385 : f32
    %53 = vector.broadcast %cst_33 : f32 to vector<2x8x8xf32>
    %54 = arith.mulf %52, %53 : vector<2x8x8xf32>
    %cst_34 = arith.constant dense<0xFF800000> : vector<2x8xf32>
    %55 = vector.multi_reduction <maximumf>, %54, %cst_34 [2] : vector<2x8x8xf32> to vector<2x8xf32>
    %56 = vector.shape_cast %55 : vector<2x8xf32> to vector<2x8x1xf32>
    %57 = vector.broadcast %56 : vector<2x8x1xf32> to vector<2x8x8xf32>
    %58 = arith.subf %54, %57 : vector<2x8x8xf32>
    %59 = math.exp %58 : vector<2x8x8xf32>
    %cst_35 = arith.constant dense<0.000000e+00> : vector<2x8xf32>
    %60 = vector.multi_reduction <add>, %59, %cst_35 [2] : vector<2x8x8xf32> to vector<2x8xf32>
    %61 = vector.shape_cast %60 : vector<2x8xf32> to vector<2x8x1xf32>
    %62 = vector.broadcast %61 : vector<2x8x1xf32> to vector<2x8x8xf32>
    %63 = arith.divf %59, %62 : vector<2x8x8xf32>
    "tpu.trace_start"() <{level = 10 : i32, message = "bqk,bkd->bqd"}> : () -> ()
    %cst_36 = arith.constant dense<0.000000e+00> : vector<2x8x8xf32>
    %64 = tpu.matmul %63, %51, %cst_36 {dimension_numbers = #tpu.dot_dimension_numbers<[2], [1], [1], [2], [0, 0, 0, 1, 1, 2], [0], [0]>} : vector<2x8x8xf32>, vector<2x8x8xf32>, vector<2x8x8xf32> -> vector<2x8x8xf32>
    "tpu.trace_stop"() : () -> ()
    %65 = vector.shape_cast %64 : vector<2x8x8xf32> to vector<16x8xf32>
    %66 = vector.extract_strided_slice %27 {offsets = [8, 0], sizes = [8, 32], strides = [1, 1]} : vector<32x32xf32> to vector<8x32xf32>
    %cst_37 = arith.constant dense<0.000000e+00> : vector<16x32xf32>
    %67 = tpu.matmul %65, %66, %cst_37 {dimension_numbers = #tpu.dot_dimension_numbers<[1], [0], [0], [1], [0, 0, 1, 1], [], []>} : vector<16x8xf32>, vector<8x32xf32>, vector<16x32xf32> -> vector<16x32xf32>
    %68 = arith.addf %48, %67 : vector<16x32xf32>
    %69 = vector.extract_strided_slice %8 {offsets = [0, 0, 16], sizes = [2, 8, 8], strides = [1, 1, 1]} : vector<2x8x32xf32> to vector<2x8x8xf32>
    %70 = vector.extract_strided_slice %17 {offsets = [0, 0, 16], sizes = [2, 8, 8], strides = [1, 1, 1]} : vector<2x8x32xf32> to vector<2x8x8xf32>
    %71 = vector.extract_strided_slice %26 {offsets = [0, 0, 16], sizes = [2, 8, 8], strides = [1, 1, 1]} : vector<2x8x32xf32> to vector<2x8x8xf32>
    "tpu.trace_start"() <{level = 10 : i32, message = "bqd,bkd->bqk"}> : () -> ()
    %cst_38 = arith.constant dense<0.000000e+00> : vector<2x8x8xf32>
    %72 = tpu.matmul %69, %70, %cst_38 {dimension_numbers = #tpu.dot_dimension_numbers<[2], [2], [1], [1], [0, 0, 0, 1, 1, 1], [0], [0]>} : vector<2x8x8xf32>, vector<2x8x8xf32>, vector<2x8x8xf32> -> vector<2x8x8xf32>
    "tpu.trace_stop"() : () -> ()
    %cst_39 = arith.constant 0.353553385 : f32
    %73 = vector.broadcast %cst_39 : f32 to vector<2x8x8xf32>
    %74 = arith.mulf %72, %73 : vector<2x8x8xf32>
    %cst_40 = arith.constant dense<0xFF800000> : vector<2x8xf32>
    %75 = vector.multi_reduction <maximumf>, %74, %cst_40 [2] : vector<2x8x8xf32> to vector<2x8xf32>
    %76 = vector.shape_cast %75 : vector<2x8xf32> to vector<2x8x1xf32>
    %77 = vector.broadcast %76 : vector<2x8x1xf32> to vector<2x8x8xf32>
    %78 = arith.subf %74, %77 : vector<2x8x8xf32>
    %79 = math.exp %78 : vector<2x8x8xf32>
    %cst_41 = arith.constant dense<0.000000e+00> : vector<2x8xf32>
    %80 = vector.multi_reduction <add>, %79, %cst_41 [2] : vector<2x8x8xf32> to vector<2x8xf32>
    %81 = vector.shape_cast %80 : vector<2x8xf32> to vector<2x8x1xf32>
    %82 = vector.broadcast %81 : vector<2x8x1xf32> to vector<2x8x8xf32>
    %83 = arith.divf %79, %82 : vector<2x8x8xf32>
    "tpu.trace_start"() <{level = 10 : i32, message = "bqk,bkd->bqd"}> : () -> ()
    %cst_42 = arith.constant dense<0.000000e+00> : vector<2x8x8xf32>
    %84 = tpu.matmul %83, %71, %cst_42 {dimension_numbers = #tpu.dot_dimension_numbers<[2], [1], [1], [2], [0, 0, 0, 1, 1, 2], [0], [0]>} : vector<2x8x8xf32>, vector<2x8x8xf32>, vector<2x8x8xf32> -> vector<2x8x8xf32>
    "tpu.trace_stop"() : () -> ()
    %85 = vector.shape_cast %84 : vector<2x8x8xf32> to vector<16x8xf32>
    %86 = vector.extract_strided_slice %27 {offsets = [16, 0], sizes = [8, 32], strides = [1, 1]} : vector<32x32xf32> to vector<8x32xf32>
    %cst_43 = arith.constant dense<0.000000e+00> : vector<16x32xf32>
    %87 = tpu.matmul %85, %86, %cst_43 {dimension_numbers = #tpu.dot_dimension_numbers<[1], [0], [0], [1], [0, 0, 1, 1], [], []>} : vector<16x8xf32>, vector<8x32xf32>, vector<16x32xf32> -> vector<16x32xf32>
    %88 = arith.addf %68, %87 : vector<16x32xf32>
    %89 = vector.extract_strided_slice %8 {offsets = [0, 0, 24], sizes = [2, 8, 8], strides = [1, 1, 1]} : vector<2x8x32xf32> to vector<2x8x8xf32>
    %90 = vector.extract_strided_slice %17 {offsets = [0, 0, 24], sizes = [2, 8, 8], strides = [1, 1, 1]} : vector<2x8x32xf32> to vector<2x8x8xf32>
    %91 = vector.extract_strided_slice %26 {offsets = [0, 0, 24], sizes = [2, 8, 8], strides = [1, 1, 1]} : vector<2x8x32xf32> to vector<2x8x8xf32>
    "tpu.trace_start"() <{level = 10 : i32, message = "bqd,bkd->bqk"}> : () -> ()
    %cst_44 = arith.constant dense<0.000000e+00> : vector<2x8x8xf32>
    %92 = tpu.matmul %89, %90, %cst_44 {dimension_numbers = #tpu.dot_dimension_numbers<[2], [2], [1], [1], [0, 0, 0, 1, 1, 1], [0], [0]>} : vector<2x8x8xf32>, vector<2x8x8xf32>, vector<2x8x8xf32> -> vector<2x8x8xf32>
    "tpu.trace_stop"() : () -> ()
    %cst_45 = arith.constant 0.353553385 : f32
    %93 = vector.broadcast %cst_45 : f32 to vector<2x8x8xf32>
    %94 = arith.mulf %92, %93 : vector<2x8x8xf32>
    %cst_46 = arith.constant dense<0xFF800000> : vector<2x8xf32>
    %95 = vector.multi_reduction <maximumf>, %94, %cst_46 [2] : vector<2x8x8xf32> to vector<2x8xf32>
    %96 = vector.shape_cast %95 : vector<2x8xf32> to vector<2x8x1xf32>
    %97 = vector.broadcast %96 : vector<2x8x1xf32> to vector<2x8x8xf32>
    %98 = arith.subf %94, %97 : vector<2x8x8xf32>
    %99 = math.exp %98 : vector<2x8x8xf32>
    %cst_47 = arith.constant dense<0.000000e+00> : vector<2x8xf32>
    %100 = vector.multi_reduction <add>, %99, %cst_47 [2] : vector<2x8x8xf32> to vector<2x8xf32>
    %101 = vector.shape_cast %100 : vector<2x8xf32> to vector<2x8x1xf32>
    %102 = vector.broadcast %101 : vector<2x8x1xf32> to vector<2x8x8xf32>
    %103 = arith.divf %99, %102 : vector<2x8x8xf32>
    "tpu.trace_start"() <{level = 10 : i32, message = "bqk,bkd->bqd"}> : () -> ()
    %cst_48 = arith.constant dense<0.000000e+00> : vector<2x8x8xf32>
    %104 = tpu.matmul %103, %91, %cst_48 {dimension_numbers = #tpu.dot_dimension_numbers<[2], [1], [1], [2], [0, 0, 0, 1, 1, 2], [0], [0]>} : vector<2x8x8xf32>, vector<2x8x8xf32>, vector<2x8x8xf32> -> vector<2x8x8xf32>
    "tpu.trace_stop"() : () -> ()
    %105 = vector.shape_cast %104 : vector<2x8x8xf32> to vector<16x8xf32>
    %106 = vector.extract_strided_slice %27 {offsets = [24, 0], sizes = [8, 32], strides = [1, 1]} : vector<32x32xf32> to vector<8x32xf32>
    %cst_49 = arith.constant dense<0.000000e+00> : vector<16x32xf32>
    %107 = tpu.matmul %105, %106, %cst_49 {dimension_numbers = #tpu.dot_dimension_numbers<[1], [0], [0], [1], [0, 0, 1, 1], [], []>} : vector<16x8xf32>, vector<8x32xf32>, vector<16x32xf32> -> vector<16x32xf32>
    %108 = arith.addf %88, %107 : vector<16x32xf32>
    %c0_50 = arith.constant 0 : index
    %c0_51 = arith.constant 0 : index
    %109 = vector.load %arg7[%c0_50, %c0_51] : memref<1x32xf32, #tpu.memory_space<vmem>>, vector<1x32xf32>
    %110 = vector.broadcast %109 : vector<1x32xf32> to vector<16x32xf32>
    %111 = arith.addf %108, %110 : vector<16x32xf32>
    %c0_52 = arith.constant 0 : index
    %c0_53 = arith.constant 0 : index
    %112 = vector.load %arg8[%c0_52, %c0_53] : memref<16x32xf32, #tpu.memory_space<vmem>>, vector<16x32xf32>
    tpu.vector_store %arg8[%c0_52, %c0_53], %111 {strides = array<i32>} : memref<16x32xf32, #tpu.memory_space<vmem>>, vector<16x32xf32>,
    return
  }
  func.func @transform_0(%arg0: i32) -> (i32, i32) {
    %c0_i32 = arith.constant 0 : i32
    %c0_i32_0 = arith.constant 0 : i32
    %c0_i32_1 = arith.constant 0 : i32
    return %c0_i32, %c0_i32_0 : i32, i32
  }
  func.func @transform_1(%arg0: i32) -> (i32, i32) {
    %c0_i32 = arith.constant 0 : i32
    %c0_i32_0 = arith.constant 0 : i32
    %c0_i32_1 = arith.constant 0 : i32
    return %c0_i32, %c0_i32_0 : i32, i32
  }
  func.func @transform_2(%arg0: i32) -> (i32, i32) {
    %c0_i32 = arith.constant 0 : i32
    %c0_i32_0 = arith.constant 0 : i32
    %c0_i32_1 = arith.constant 0 : i32
    return %c0_i32, %c0_i32_0 : i32, i32
  }
  func.func @transform_3(%arg0: i32) -> (i32, i32, i32) {
    %c0_i32 = arith.constant 0 : i32
    %c0_i32_0 = arith.constant 0 : i32
    %c0_i32_1 = arith.constant 0 : i32
    %c0_i32_2 = arith.constant 0 : i32
    return %c0_i32, %c0_i32_0, %c0_i32_1 : i32, i32, i32
  }
  func.func @transform_4(%arg0: i32) -> (i32, i32, i32) {
    %c0_i32 = arith.constant 0 : i32
    %c0_i32_0 = arith.constant 0 : i32
    %c0_i32_1 = arith.constant 0 : i32
    %c0_i32_2 = arith.constant 0 : i32
    return %c0_i32, %c0_i32_0, %c0_i32_1 : i32, i32, i32
  }
  func.func @transform_5(%arg0: i32) -> (i32, i32) {
    %c0_i32 = arith.constant 0 : i32
    %c0_i32_0 = arith.constant 0 : i32
    %c0_i32_1 = arith.constant 0 : i32
    return %c0_i32, %c0_i32_0 : i32, i32
  }
  func.func @transform_6(%arg0: i32) -> (i32, i32) {
    %c0_i32 = arith.constant 0 : i32
    %c0_i32_0 = arith.constant 0 : i32
    %c0_i32_1 = arith.constant 0 : i32
    return %c0_i32, %c0_i32_0 : i32, i32
  }
  func.func @transform_7(%arg0: i32) -> (i32, i32) {
    %c0_i32 = arith.constant 0 : i32
    %c0_i32_0 = arith.constant 0 : i32
    %c0_i32_1 = arith.constant 0 : i32
    return %c0_i32, %c0_i32_0 : i32, i32
  }
}

</mosaic_0001>

<bundles_post_ra>
// kernel: tpu_custom_call.1
= control target key start
LH: loop header
LB: loop body
LE: loop exit
PB: predicated region body
PF: predicated region fallthrough
CT: control target
= control target key end

     0   :  { %12 = vsyncpa [#allocation3], 0  ;;  %s2852_s0 = inlined_call_operand.hbm [shape: f32[16,32], index: 0, kind: input, shape index: {}]   ;;  %s2853_s1 = inlined_call_operand.hbm [shape: f32[16,32], index: 1, kind: input, shape index: {}]   ;;  %s2854_s2 = inlined_call_operand.hbm [shape: f32[16,32], index: 2, kind: input, shape index: {}]   ;;  %s2855_s3 = inlined_call_operand.hbm [shape: f32[3,32,32], index: 3, kind: input, shape index: {}]   ;;  %s2856_s4 = inlined_call_operand.vmem [shape: f32[3,1,32], index: 4, kind: input, shape index: {}]   ;;  %s2857_s5 = inlined_call_operand.hbm [shape: f32[32,32], index: 5, kind: input, shape index: {}]   ;;  %s2858_s6 = inlined_call_operand.vmem [shape: f32[1,32], index: 6, kind: input, shape index: {}]   ;;  %s2859_s7 = inlined_call_operand.hbm [shape: f32[16,32], index: 7, kind: output, shape index: {}]  }
   0x1   :  { %13 = vsyncpa [#allocation6], 0 }
   0x2   :  { %14 = vsyncpa [#allocation9], 0 }
   0x3   :  { %15 = vsyncpa [#allocation4], 0  ;;  %s2519_s24 = smov [#allocation5]   ;;  %s2520_s26 = smov [#allocation8]  }
   0x4   :  { %s33_s25 = sshll.u32 %s2519_s24, 4  ;;  %s57_s27 = sshll.u32 %s2520_s26, 4  ;;  %s34_s25 = int_to_ptr.vmem [resolvable:$true] %s33_s25  ;;  %s2572_s27 = int_to_ptr.vmem [resolvable:$true] %s57_s27 }
   0x5   :  { %s2379_s30 = scalar_lea.hbm %s2853_s1, 256 }
   0x6   :  { %p2380_p0 = scmp.ne.s32.totalorder %s2853_s1, %s2379_s30  ;;  %p2383_p1 = scmp.lt.u32.totalorder %s2379_s30, %s2853_s1 }
   0x8   :  { %p2385_p2 = pnand %p2383_p1, %p2380_p0 }
   0xa   :  { %2388 = shalt.err (!%p2385_p2)
}
   0xb   :  { %s2389_s12 = scalar_lea.vmem %s34_s25, 256  ;;  %p2394_p4 = scmp.lt.s32.totalorder %s34_s25, %s34_s25 }
   0xc   :  { %p2390_p3 = scmp.ne.s32.totalorder %s34_s25, %s2389_s12  ;;  %p2395_p5 = scmp.lt.s32.totalorder %s2389_s12, %s2389_s12 }
   0xe   :  { %p2396_p6 = por %p2395_p5, %p2394_p4 }
  0x10   :  { %p2397_p7 = pnand %p2396_p6, %p2390_p3 }
  0x12   :  { %2400 = shalt.err (!%p2397_p7)
}
  0x13   :  { %s2521_s13 = smov 128   ;;  %s2522_s14 = smov 8  }
  0x14   :  { %39 = dma.hbm_to_vmem [thread:$0]  %s2853_s1, 256, %s34_s25, [#allocation6], %s2521_s13, %s2521_s13, %s2522_s14  }
  0x15   :  { %s2401_s19 = scalar_lea.hbm %s2855_s3, 1536 }
  0x16   :  { %p2402_p8 = scmp.ne.s32.totalorder %s2855_s3, %s2401_s19  ;;  %p2405_p9 = scmp.lt.u32.totalorder %s2401_s19, %s2855_s3 }
  0x18   :  { %p2407_p10 = pnand %p2405_p9, %p2402_p8 }
  0x1a   :  { %2410 = shalt.err (!%p2407_p10)
}
  0x1b   :  { %s2411_s24 = scalar_lea.vmem %s2572_s27, 1536  ;;  %p2416_p12 = scmp.lt.s32.totalorder %s2572_s27, %s2572_s27 }
  0x1c   :  { %p2412_p11 = scmp.ne.s32.totalorder %s2572_s27, %s2411_s24  ;;  %p2417_p13 = scmp.lt.s32.totalorder %s2411_s24, %s2411_s24 }
  0x1e   :  { %p2418_p0 = por %p2417_p13, %p2416_p12 }
  0x20   :  { %p2419_p1 = pnand %p2418_p0, %p2412_p11 }
  0x22   :  { %2422 = shalt.err (!%p2419_p1)
}
  0x23   :  { %63 = dma.hbm_to_vmem [thread:$0]  %s2855_s3, 1536, %s2572_s27, [#allocation9], %s2521_s13, %s2521_s13, %s2522_s14  }
  0x24   :  { %s2523_s26 = smov [#allocation2]   ;;  %s2524_s29 = smov [#allocation7]  }
  0x25   :  { %s21_s28 = sshll.u32 %s2523_s26, 4  ;;  %s45_s30 = sshll.u32 %s2524_s29, 4  ;;  %s22_s28 = int_to_ptr.vmem [resolvable:$true] %s21_s28  ;;  %s2609_s30 = int_to_ptr.vmem [resolvable:$true] %s45_s30 }
  0x26   :  { %s2423_s10 = scalar_lea.hbm %s2852_s0, 256 }
  0x27   :  { %p2424_p2 = scmp.ne.s32.totalorder %s2852_s0, %s2423_s10  ;;  %p2427_p3 = scmp.lt.u32.totalorder %s2423_s10, %s2852_s0 }
  0x29   :  { %p2429_p4 = pnand %p2427_p3, %p2424_p2 }
  0x2b   :  { %2432 = shalt.err (!%p2429_p4)
}
  0x2c   :  { %s2433_s3 = scalar_lea.vmem %s22_s28, 256  ;;  %p2438_p6 = scmp.lt.s32.totalorder %s22_s28, %s22_s28 }
  0x2d   :  { %p2434_p5 = scmp.ne.s32.totalorder %s22_s28, %s2433_s3  ;;  %p2439_p7 = scmp.lt.s32.totalorder %s2433_s3, %s2433_s3 }
  0x2f   :  { %p2440_p8 = por %p2439_p7, %p2438_p6 }
  0x31   :  { %p2441_p9 = pnand %p2440_p8, %p2434_p5 }
  0x33   :  { %2444 = shalt.err (!%p2441_p9)
}
  0x34   :  { %27 = dma.hbm_to_vmem [thread:$0]  %s2852_s0, 256, %s22_s28, [#allocation3], %s2521_s13, %s2521_s13, %s2522_s14  }
  0x35   :  { %s2445_s20 = scalar_lea.hbm %s2854_s2, 256 }
  0x36   :  { %p2446_p10 = scmp.ne.s32.totalorder %s2854_s2, %s2445_s20  ;;  %p2449_p11 = scmp.lt.u32.totalorder %s2445_s20, %s2854_s2 }
  0x38   :  { %p2451_p12 = pnand %p2449_p11, %p2446_p10 }
  0x3a   :  { %2454 = shalt.err (!%p2451_p12)
}
  0x3b   :  { %s2455_s1 = scalar_lea.vmem %s2609_s30, 256  ;;  %p2460_p0 = scmp.lt.s32.totalorder %s2609_s30, %s2609_s30 }
  0x3c   :  { %p2456_p13 = scmp.ne.s32.totalorder %s2609_s30, %s2455_s1  ;;  %p2461_p1 = scmp.lt.s32.totalorder %s2455_s1, %s2455_s1 }
  0x3e   :  { %p2462_p2 = por %p2461_p1, %p2460_p0 }
  0x40   :  { %p2463_p3 = pnand %p2462_p2, %p2456_p13 }
  0x42   :  { %2466 = shalt.err (!%p2463_p3)
}
  0x43   :  { %51 = dma.hbm_to_vmem [thread:$0]  %s2854_s2, 256, %s2609_s30, [#allocation6], %s2521_s13, %s2521_s13, %s2522_s14  }
  0x44   :  { %s2525_s26 = smov [#allocation10]   ;;  %s2467_s9 = scalar_lea.hbm %s2857_s5, 512 }
  0x45   :  { %s71_s28 = sshll.u32 %s2525_s26, 4  ;;  %p2468_p4 = scmp.ne.s32.totalorder %s2857_s5, %s2467_s9  ;;  %s72_s28 = int_to_ptr.vmem [resolvable:$true] %s71_s28 }
  0x46   :  { %p2471_p5 = scmp.lt.u32.totalorder %s2467_s9, %s2857_s5 }
  0x48   :  { %p2473_p6 = pnand %p2471_p5, %p2468_p4 }
  0x4a   :  { %2476 = shalt.err (!%p2473_p6)
}
  0x4b   :  { %s2477_s16 = scalar_lea.vmem %s72_s28, 512  ;;  %p2482_p8 = scmp.lt.s32.totalorder %s72_s28, %s72_s28 }
  0x4c   :  { %p2478_p7 = scmp.ne.s32.totalorder %s72_s28, %s2477_s16  ;;  %p2483_p9 = scmp.lt.s32.totalorder %s2477_s16, %s2477_s16 }
  0x4e   :  { %p2484_p10 = por %p2483_p9, %p2482_p8 }
  0x50   :  { %p2485_p11 = pnand %p2484_p10, %p2478_p7 }
  0x52   :  { %2488 = shalt.err (!%p2485_p11)
}
  0x53   :  { %77 = dma.hbm_to_vmem [thread:$0]  %s2857_s5, 512, %s72_s28, [#allocation9], %s2521_s13, %s2521_s13, %s2522_s14  }
  0x54   :  { %2511 = dma.done.wait [#allocation3], 256  }
  0x55   :  { %2512 = vsyncadd [#allocation3], 4294967040 }
  0x56   :  { %2513 = dma.done.wait [#allocation6], 512  }
  0x57   :  { %2514 = vsyncadd [#allocation6], 4294966784 }
  0x58   :  { %2515 = dma.done.wait [#allocation9], 2048  }
  0x59   :  { %2516 = vsyncadd [#allocation9], 4294965248  ;;  %v193_v0 = vld [vmem:[#allocation8 + $0x20] sm:$0xff]  ;;  %v194_v1 = vld [vmem:[#allocation8 + $0x28] sm:$0xff]  ;;  %vm108_vm0 = vcmask 261120   ;;  %v2526_v16 = vmov 0.0  }
  0x5a   :  { %v97_v2 = vld [vmem:[#allocation8] sm:$0xff]  ;;  %v2312_v3 = vpack.c.bf16 %v194_v1, %v193_v0  ;;  %v98_v4 = vld [vmem:[#allocation8 + $0x8] sm:$0xff]  ;;  %v195_v5 = vld [vmem:[#allocation8 + $0x30] sm:$0xff]  ;;  %vm2527_vm1 = vmmov 0   ;;  %vm386_vm2 = vcmask 64512   ;;  %s2528_s18 = smov 120  }
  0x5b   :  { %v196_v6 = vld [vmem:[#allocation8 + $0x38] sm:$0xff]  ;;  %v2304_v7 = vpack.c.bf16 %v98_v4, %v97_v2  ;;  %v99_v9 = vld [vmem:[#allocation8 + $0x10] sm:$0xff]  ;;  %v190_v11 = vld [vmem:[#allocation5] sm:$0xff]  ;;  %s2529_s21 = smov 112   ;;  %s2531_s24 = smov [#allocation11]  }
  0x5c   :  { %v2316_v8 = vpack.c.bf16 %v196_v6, %v195_v5  ;;  %v100_v10 = vld [vmem:[#allocation8 + $0x18] sm:$0xff]  ;;  %2313 = vmatprep.subr.bf16.mxu1 %v2312_v3  ;;  %2190 = vmatprep.mubr.msk.f32.mxu1 %vm108_vm0, %v190_v11  ;;  %v95_v13 = vld [vmem:[#allocation2] sm:$0xff]  ;;  %v191_v14 = vld [vmem:[#allocation5 + $0x8] sm:$0xff]  ;;  %s2051_s1 = sshll.u32 %s2531_s24, 4  ;;  %s2052_s1 = int_to_ptr.vmem [resolvable:$true] %s2051_s1 }
  0x5d   :  { %v2308_v12 = vpack.c.bf16 %v100_v10, %v99_v9  ;;  %2315 = vmatpush3.bf16.msra.mxu1 %v2312_v3  ;;  %2305 = vmatprep.subr.bf16.mxu0 %v2304_v7  ;;  %v96_v15 = vld [vmem:[#allocation2 + $0x8] sm:$0xff]  ;;  %v2069_v17 = vld [vmem:[%s2856_s4 + $0x1] ss:$0 sm:$0xff]  ;;  %v2065_v19 = vld [vmem:[%s2856_s4] ss:$0 sm:$0xff]  ;;  %s2489_s0 = scalar_lea.vmem %s2052_s1, 256  ;;  %p2494_p13 = scmp.lt.s32.totalorder %s2052_s1, %s2052_s1 }
  0x5e   :  { %2307 = vmatpush3.bf16.msra.mxu0 %v2304_v7  ;;  %2317 = vmatprep.subr.bf16.mxu1 %v2316_v8  ;;  %v289_v27 = vld [vmem:[#allocation8 + $0x40] sm:$0xff]  ;;  %v290_v28 = vld [vmem:[#allocation8 + $0x48] sm:$0xff]  ;;  %v291_v29 = vld [vmem:[#allocation8 + $0x50] sm:$0xff]  ;;  %p2490_p12 = scmp.ne.s32.totalorder %s2052_s1, %s2489_s0  ;;  %p2495_p0 = scmp.lt.s32.totalorder %s2489_s0, %s2489_s0 }
  0x5f   :  { %2309 = vmatprep.subr.bf16.mxu0 %v2308_v12  ;;  %2179 = vmatprep.mubr.msk.f32.mxu0 %vm108_vm0, %v95_v13  ;;  %v2320_v30 = vpack.c.bf16 %v290_v28, %v289_v27  ;;  %v292_v31 = vld [vmem:[#allocation8 + $0x58] sm:$0xff]  ;;  %v286_v32 = vld [vmem:[#allocation7] sm:$0xff] }
  0x60   :  { %v2324_v33 = vpack.c.bf16 %v292_v31, %v291_v29  ;;  %v287_v34 = vld [vmem:[#allocation7 + $0x8] sm:$0xff]  ;;  %v2073_v54 = vld [vmem:[%s2856_s4 + $0x2] ss:$0 sm:$0xff]  ;;  %s2530_s4 = smov 104   ;;  %p2496_p1 = por %p2495_p0, %p2494_p13 }
  0x61   :  { %2319 = vmatpush3.bf16.msra.mxu1 %v2316_v8 }
  0x62   :  { %2311 = vmatpush3.bf16.msra.mxu0 %v2308_v12  ;;  %2204 = vmatprep.subr.mxu1 %v2526_v16  ;;  %p2497_p2 = pnand %p2496_p1, %p2490_p12 }
  0x63   :  { %2321 = vmatprep.subr.bf16.mxu0 %v2320_v30 }
  0x64   :  { %2191 = vmatmul.mubr.msk.f32.vlgmr.msra.gmra.mrb[0].mxu1 %vm108_vm0, %v191_v14 }
  0x65   :  { %2180 = vmatmul.mubr.msk.f32.vlgmr.msra.gmra.mrb[0].mxu0 %vm108_vm0, %v96_v15  ;;  %2206 = vmatprep.mubr.msk.f32.mxu1 %vm2527_vm1, %v2526_v16 }
  0x66   :  { %2201 = vmatprep.mubr.msk.f32.mxu0 %vm108_vm0, %v286_v32  ;;  %2323 = vmatpush3.bf16.msra.mxu0 %v2320_v30 }
  0x67   :  { %2325 = vmatprep.subr.bf16.mxu0 %v2324_v33 }
  0x6a   :  { %2327 = vmatpush3.bf16.msra.mxu0 %v2324_v33 }
  0x6b   :  { %2224 = vmatprep.subr.mxu0 %v2526_v16 }
  0x6d   :  { %2202 = vmatmul.mubr.msk.f32.vlgmr.msra.gmra.mrb[2].mxu0 %vm108_vm0, %v287_v34 }
  0x6e   :  { %2226 = vmatprep.mubr.msk.f32.mxu0 %vm2527_vm1, %v2526_v16 }
 0x137   :  { %v2192_v18 = vpop.f32.mrb[0].mxu1 }
 0x138   :  { %v277_v20 = vpop.f32.mrb[1].mxu1  ;;  %v2181_v21 = vpop.f32.mrb[0].mxu0  ;;  %v2681_v25 = vadd.f32 %v2192_v18, %v2069_v17 }
 0x139   :  { %v2674_v22 = vadd.f32 %v2069_v17, %v277_v20  ;;  %v181_v23 = vpop.f32.mrb[1].mxu0  ;;  %v2689_v26 = vadd.f32 %v2181_v21, %v2065_v19 }
 0x13a   :  { %v2676_v24 = vadd.f32 %v2065_v19, %v181_v23 }
 0x13b   :  { %2205 = vmatpush3.xpose.msk.msra.mxu1 %vm386_vm2, %v2674_v22 }
 0x13c   :  { %2209 = vmatprep.subr.mxu1 %v2526_v16 }
 0x13e   :  { %2207 = vmatmul.mubr.msk.f32.vlgmr.msra.gmra.mrb[2].mxu1 %vm386_vm2, %v2676_v24 }
 0x13f   :  { %2210 = vmatpush3.xpose.msk.msra.mxu1 %vm386_vm2, %v2681_v25  ;;  %2211 = vmatprep.mubr.msk.f32.mxu1 %vm2527_vm1, %v2526_v16 }
 0x140   :  { %2214 = vmatprep.subr.mxu1 %v2526_v16  ;;  %v2203_v53 = vpop.f32.mrb[2].mxu0 }
 0x141   :  { %v373_v55 = vpop.f32.mrb[3].mxu0  ;;  %v2712_v56 = vadd.f32 %v2203_v53, %v2073_v54 }
 0x142   :  { %2212 = vmatmul.mubr.msk.f32.vlgmr.msra.gmra.mrb[4].mxu1 %vm386_vm2, %v2689_v26  ;;  %v2714_v57 = vadd.f32 %v2073_v54, %v373_v55 }
 0x143   :  { %2216 = vmatprep.mubr.msk.f32.mxu1 %vm2527_vm1, %v2526_v16 }
 0x144   :  { %2215 = vmatpush3.msra.mxu1 %v2714_v57 }
 0x145   :  { %2219 = vmatprep.subr.mxu1 %v2526_v16 }
 0x211   :  { %v459_v35 = vpop.f32.mrb[2].mxu1 }
 0x212   :  { %v539_v36 = vmul.f32 0.35355338, %v459_v35  ;;  %v2208_v37 = vpop.f32.mrb[3].mxu1 }
 0x214   :  { %v541_v38 = vsel %vm386_vm2, %v539_v36, -inf }
 0x215   :  { %542 = vmax.xlane.f32.xlu0 %v541_v38  ;;  %v535_v39 = vpop.f32.mrb[4].mxu1 }
 0x216   :  { %v540_v40 = vmul.f32 0.35355338, %v535_v39  ;;  %v2213_v41 = vpop.f32.mrb[5].mxu1 }
 0x218   :  { %v544_v42 = vsel %vm386_vm2, %v540_v40, -inf }
 0x219   :  { %545 = vmax.xlane.f32.xlu0 %v544_v42 }
 0x22f   :  { %789 = vrot.lane.b32.xlu0 %v2681_v25, %s2528_s18 }
 0x2a2   :  { %v543_v43 = vpop.xlane.xlu0 %542 }
 0x2a3   :  { %v547_v44 = vsub.f32 %v539_v36, %v543_v43 }
 0x2a5   :  { %v549_v45 = vmul.f32 1.442695, %v547_v44 }
 0x2a6   :  { %v546_v46 = vpop.xlane.xlu0 %545 }
 0x2a7   :  { %2347 = vpow2.f32 %v549_v45  ;;  %v548_v47 = vsub.f32 %v540_v40, %v546_v46 }
 0x2a9   :  { %v551_v48 = vmul.f32 1.442695, %v548_v47 }
 0x2aa   :  { %v790_v3 = vpop.permute.xlu0 %789 }
 0x2ab   :  { %2349 = vpow2.f32 %v551_v48 }
 0x2b1   :  { %v2348_v49 = vpop.eup %2347 }
 0x2b2   :  { %v553_v50 = vsel %vm386_vm2, %v2348_v49, 0.0 }
 0x2b3   :  { %554 = vadd.xlane.f32.xlu1 %v553_v50 }
 0x2b5   :  { %v2350_v51 = vpop.eup %2349 }
 0x2b6   :  { %v556_v52 = vsel %vm386_vm2, %v2350_v51, 0.0 }
 0x2b7   :  { %557 = vadd.xlane.f32.xlu1 %v556_v52  ;;  %v382_v52 = vld [vmem:[#allocation10] sm:$0xff] }
 0x2c8   :  { %787 = vrot.lane.b32.xlu1 %v2689_v26, %s2528_s18 }
 0x2cc   :  { %711 = vrot.lane.b32.xlu1 %v2674_v22, %s2528_s18 }
 0x2d0   :  { %709 = vrot.lane.b32.xlu1 %v2676_v24, %s2528_s18 }
 0x2d4   :  { %1207 = vrot.lane.b32.xlu1 %v2674_v22, %s2529_s21 }
 0x340   :  { %v555_v58 = vpop.xlane.xlu1 %554 }
 0x341   :  { %2351 = vrcp.f32 %v555_v58 }
 0x344   :  { %v558_v59 = vpop.xlane.xlu1 %557 }
 0x345   :  { %2353 = vrcp.f32 %v558_v59 }
 0x348   :  { %v788_v60 = vpop.permute.xlu1 %787 }
 0x34b   :  { %v2352_v61 = vpop.eup %2351 }
 0x34c   :  { %v560_v62 = vmul.f32 %v2352_v61, %v2348_v49  ;;  %v712_v63 = vpop.permute.xlu1 %711 }
 0x34d   :  { %2225 = vmatpush3.xpose.msk.msra.mxu0 %vm386_vm2, %v712_v63 }
 0x34e   :  { %2217 = vmatmul.mubr.msk.f32.vlgmr.msra.gmra.mrb[6].mxu1 %vm386_vm2, %v560_v62  ;;  %2234 = vmatprep.subr.mxu0 %v2526_v16 }
 0x34f   :  { %v2354_v0 = vpop.eup %2353  ;;  %2220 = vmatpush3.msra.mxu1 %v2712_v56  ;;  %2221 = vmatprep.mubr.msk.f32.mxu1 %vm2527_vm1, %v2526_v16 }
 0x350   :  { %v562_v1 = vmul.f32 %v2354_v0, %v2350_v51  ;;  %v710_v2 = vpop.permute.xlu1 %709  ;;  %2229 = vmatprep.subr.mxu1 %v2526_v16  ;;  %v383_v51 = vld [vmem:[#allocation10 + $0x8] sm:$0xff] }
 0x351   :  { %2227 = vmatmul.mubr.msk.f32.vlgmr.msra.gmra.mrb[4].mxu0 %vm386_vm2, %v710_v2 }
 0x352   :  { %2222 = vmatmul.mubr.msk.f32.vlgmr.msra.gmra.mrb[8].mxu1 %vm386_vm2, %v562_v1  ;;  %2236 = vmatprep.mubr.msk.f32.mxu0 %vm2527_vm1, %v2526_v16 }
 0x353   :  { %2231 = vmatprep.mubr.msk.f32.mxu1 %vm2527_vm1, %v2526_v16 }
 0x354   :  { %v1208_v27 = vpop.permute.xlu1 %1207 }
 0x356   :  { %2230 = vmatpush3.xpose.msk.msra.mxu1 %vm386_vm2, %v790_v3 }
 0x357   :  { %2239 = vmatprep.subr.mxu1 %v2526_v16 }
 0x359   :  { %2232 = vmatmul.mubr.msk.f32.vlgmr.msra.gmra.mrb[10].mxu1 %vm386_vm2, %v788_v60 }
 0x35a   :  { %2241 = vmatprep.mubr.msk.f32.mxu1 %vm2527_vm1, %v2526_v16 }
 0x421   :  { %v2742_v4 = vpop.f32.mrb[6].mxu1 }
 0x422   :  { %v2218_v5 = vpop.f32.mrb[7].mxu1 }
 0x423   :  { %v384_v5 = vld [vmem:[#allocation10 + $0x10] sm:$0xff] }
 0x424   :  { %v783_v6 = vpop.f32.mrb[4].mxu0 }
 0x425   :  { %v2744_v7 = vpop.f32.mrb[8].mxu1  ;;  %v2228_v8 = vpop.f32.mrb[5].mxu0  ;;  %v865_v21 = vmul.f32 0.35355338, %v783_v6 }
 0x426   :  { %v2223_v9 = vpop.f32.mrb[9].mxu1 }
 0x427   :  { %v867_v23 = vsel %vm386_vm2, %v865_v21, -inf }
 0x42c   :  { %v861_v10 = vpop.f32.mrb[10].mxu1 }
 0x42d   :  { %v866_v11 = vmul.f32 0.35355338, %v861_v10  ;;  %v2233_v12 = vpop.f32.mrb[11].mxu1 }
 0x42f   :  { %v870_v13 = vsel %vm386_vm2, %v866_v11, -inf }
 0x430   :  { %871 = vmax.xlane.f32.xlu0 %v870_v13 }
 0x446   :  { %967 = vrot.lane.b32.xlu0 %v2712_v56, %s2528_s18 }
 0x44a   :  { %1205 = vrot.lane.b32.xlu0 %v2676_v24, %s2529_s21 }
 0x44e   :  { %1283 = vrot.lane.b32.xlu0 %v2689_v26, %s2529_s21 }
 0x4bd   :  { %v872_v14 = vpop.xlane.xlu0 %871 }
 0x4be   :  { %v874_v15 = vsub.f32 %v866_v11, %v872_v14 }
 0x4c0   :  { %v877_v17 = vmul.f32 1.442695, %v874_v15 }
 0x4c1   :  { %v968_v18 = vpop.permute.xlu0 %967 }
 0x4c2   :  { %2355 = vpow2.f32 %v877_v17  ;;  %2240 = vmatpush3.msra.mxu1 %v968_v18 }
 0x4c3   :  { %2254 = vmatprep.subr.mxu1 %v2526_v16 }
 0x4c5   :  { %v1206_v31 = vpop.permute.xlu0 %1205 }
 0x4c9   :  { %v1284_v33 = vpop.permute.xlu0 %1283 }
 0x4cc   :  { %v2356_v19 = vpop.eup %2355 }
 0x4cd   :  { %v882_v20 = vsel %vm386_vm2, %v2356_v19, 0.0 }
 0x4ce   :  { %883 = vadd.xlane.f32.xlu1 %v882_v20 }
 0x4df   :  { %1285 = vrot.lane.b32.xlu1 %v2681_v25, %s2529_s21 }
 0x503   :  { %868 = vmax.xlane.f32.xlu1 %v867_v23 }
 0x55b   :  { %v884_v28 = vpop.xlane.xlu1 %883 }
 0x55c   :  { %2357 = vrcp.f32 %v884_v28 }
 0x55f   :  { %v1286_v32 = vpop.permute.xlu1 %1285 }
 0x566   :  { %v2358_v29 = vpop.eup %2357 }
 0x567   :  { %v888_v30 = vmul.f32 %v2358_v29, %v2356_v19 }
 0x569   :  { %2242 = vmatmul.mubr.msk.f32.vlgmr.msra.gmra.mrb[12].mxu1 %vm386_vm2, %v888_v30 }
 0x56a   :  { %2255 = vmatpush3.xpose.msk.msra.mxu1 %vm386_vm2, %v1208_v27  ;;  %2256 = vmatprep.mubr.msk.f32.mxu1 %vm2527_vm1, %v2526_v16 }
 0x56b   :  { %2259 = vmatprep.subr.mxu1 %v2526_v16 }
 0x56d   :  { %2257 = vmatmul.mubr.msk.f32.vlgmr.msra.gmra.mrb[14].mxu1 %vm386_vm2, %v1206_v31 }
 0x56e   :  { %2260 = vmatpush3.xpose.msk.msra.mxu1 %vm386_vm2, %v1286_v32  ;;  %2261 = vmatprep.mubr.msk.f32.mxu1 %vm2527_vm1, %v2526_v16 }
 0x56f   :  { %2269 = vmatprep.subr.mxu1 %v2526_v16 }
 0x571   :  { %2262 = vmatmul.mubr.msk.f32.vlgmr.msra.gmra.mrb[16].mxu1 %vm386_vm2, %v1284_v33 }
 0x572   :  { %2271 = vmatprep.mubr.msk.f32.mxu1 %vm2527_vm1, %v2526_v16 }
 0x590   :  { %v869_v34 = vpop.xlane.xlu1 %868 }
 0x591   :  { %v873_v35 = vsub.f32 %v865_v21, %v869_v34 }
 0x593   :  { %v875_v36 = vmul.f32 1.442695, %v873_v35 }
 0x595   :  { %2359 = vpow2.f32 %v875_v36 }
 0x59f   :  { %v2360_v37 = vpop.eup %2359 }
 0x5a0   :  { %v879_v38 = vsel %vm386_vm2, %v2360_v37, 0.0 }
 0x5a1   :  { %880 = vadd.xlane.f32.xlu0 %v879_v38 }
 0x5b7   :  { %890 = vrot.lane.b32.xlu0 %v2714_v57, %s2528_s18 }
 0x5bb   :  { %1461 = vrot.lane.b32.xlu0 %v2712_v56, %s2529_s21 }
 0x5bf   :  { %1622 = vrot.lane.b32.xlu0 %v2674_v22, %s2530_s4 }
 0x5c3   :  { %1700 = vrot.lane.b32.xlu0 %v2681_v25, %s2530_s4 }
 0x5c7   :  { %1620 = vrot.lane.b32.xlu0 %v2676_v24, %s2530_s4 }
 0x62e   :  { %v881_v39 = vpop.xlane.xlu0 %880 }
 0x62f   :  { %2361 = vrcp.f32 %v881_v39 }
 0x632   :  { %v891_v40 = vpop.permute.xlu0 %890 }
 0x633   :  { %2235 = vmatpush3.msra.mxu0 %v891_v40 }
 0x634   :  { %2244 = vmatprep.subr.mxu0 %v383_v51 }
 0x636   :  { %v1462_v41 = vpop.permute.xlu0 %1461 }
 0x637   :  { %2270 = vmatpush3.msra.mxu1 %v1462_v41 }
 0x638   :  { %2279 = vmatprep.subr.mxu1 %v2526_v16 }
 0x639   :  { %v2362_v42 = vpop.eup %2361 }
 0x63a   :  { %v886_v43 = vmul.f32 %v2362_v42, %v2360_v37  ;;  %v1623_v8 = vpop.permute.xlu0 %1622 }
 0x63c   :  { %2237 = vmatmul.mubr.msk.f32.vlgmr.msra.gmra.mrb[6].mxu0 %vm386_vm2, %v886_v43  ;;  %v1039_v44 = vpop.f32.mrb[12].mxu1 }
 0x63d   :  { %v2243_v22 = vpop.f32.mrb[13].mxu1  ;;  %2245 = vmatpush3.msra.mxu0 %v383_v51 }
 0x63e   :  { %2249 = vmatprep.subr.mxu0 %v382_v52  ;;  %v1701_v11 = vpop.permute.xlu0 %1700 }
 0x640   :  { %v1279_v45 = vpop.f32.mrb[14].mxu1 }
 0x641   :  { %v1361_v46 = vmul.f32 0.35355338, %v1279_v45  ;;  %v2258_v25 = vpop.f32.mrb[15].mxu1 }
 0x642   :  { %v1621_v12 = vpop.permute.xlu0 %1620 }
 0x643   :  { %v1363_v47 = vsel %vm386_vm2, %v1361_v46, -inf }
 0x644   :  { %1364 = vmax.xlane.f32.xlu1 %v1363_v47  ;;  %v1357_v24 = vpop.f32.mrb[16].mxu1 }
 0x645   :  { %v1362_v48 = vmul.f32 0.35355338, %v1357_v24  ;;  %v2263_v49 = vpop.f32.mrb[17].mxu1 }
 0x647   :  { %v1366_v50 = vsel %vm386_vm2, %v1362_v48, -inf }
 0x648   :  { %1367 = vmax.xlane.f32.xlu1 %v1366_v50 }
 0x6d1   :  { %v1365_v53 = vpop.xlane.xlu1 %1364 }
 0x6d2   :  { %v1369_v54 = vsub.f32 %v1361_v46, %v1365_v53  ;;  %v385_v46 = vld [vmem:[#allocation10 + $0x18] sm:$0xff] }
 0x6d4   :  { %v1371_v55 = vmul.f32 1.442695, %v1369_v54 }
 0x6d5   :  { %v1368_v58 = vpop.xlane.xlu1 %1367 }
 0x6d6   :  { %2363 = vpow2.f32 %v1371_v55  ;;  %v1370_v59 = vsub.f32 %v1362_v48, %v1368_v58  ;;  %v2108_v48 = vld [vmem:[%s2858_s6] ss:$0 sm:$0xff] }
 0x6d8   :  { %v1373_v60 = vmul.f32 1.442695, %v1370_v59 }
 0x6da   :  { %2365 = vpow2.f32 %v1373_v60 }
 0x6e0   :  { %v2364_v61 = vpop.eup %2363 }
 0x6e1   :  { %v1375_v62 = vsel %vm386_vm2, %v2364_v61, 0.0 }
 0x6e2   :  { %1376 = vadd.xlane.f32.xlu1 %v1375_v62 }
 0x6e4   :  { %v2366_v63 = vpop.eup %2365 }
 0x6e5   :  { %v1378_v0 = vsel %vm386_vm2, %v2366_v63, 0.0 }
 0x6e6   :  { %1379 = vadd.xlane.f32.xlu1 %v1378_v0 }
 0x6f7   :  { %1385 = vrot.lane.b32.xlu1 %v2714_v57, %s2529_s21 }
 0x6fb   :  { %1698 = vrot.lane.b32.xlu1 %v2689_v26, %s2530_s4 }
 0x70f   :  { %v962_v1 = vpop.f32.mrb[6].mxu0 }
 0x710   :  { %v2238_v2 = vpop.f32.mrb[7].mxu0  ;;  %2246 = vmatprep.mubr.msk.f32.mxu0 %vm386_vm2, %v962_v1 }
 0x711   :  { %2247 = vmatmul.mubr.msk.f32.vlgmr.msra.gmra.mrb[8].mxu0 %vm386_vm2, %v1039_v44 }
 0x712   :  { %2251 = vmatprep.mubr.msk.f32.mxu0 %vm386_vm2, %v2742_v4  ;;  %2250 = vmatpush3.msra.mxu0 %v382_v52 }
 0x713   :  { %2264 = vmatprep.subr.mxu0 %v2526_v16 }
 0x719   :  { %2252 = vmatmul.mubr.msk.f32.vlgmr.msra.gmra.mrb[8].mxu0 %vm386_vm2, %v2744_v7 }
 0x71a   :  { %2266 = vmatprep.mubr.msk.f32.mxu0 %vm2527_vm1, %v2526_v16 }
 0x76f   :  { %v1377_v3 = vpop.xlane.xlu1 %1376 }
 0x770   :  { %2367 = vrcp.f32 %v1377_v3 }
 0x773   :  { %v1380_v26 = vpop.xlane.xlu1 %1379 }
 0x774   :  { %2369 = vrcp.f32 %v1380_v26 }
 0x777   :  { %v1386_v6 = vpop.permute.xlu1 %1385 }
 0x778   :  { %2265 = vmatpush3.msra.mxu0 %v1386_v6 }
 0x779   :  { %2274 = vmatprep.subr.mxu0 %v384_v5 }
 0x77a   :  { %v2368_v9 = vpop.eup %2367 }
 0x77b   :  { %v1382_v4 = vmul.f32 %v2368_v9, %v2364_v61  ;;  %v1699_v18 = vpop.permute.xlu1 %1698 }
 0x77d   :  { %2267 = vmatmul.mubr.msk.f32.vlgmr.msra.gmra.mrb[10].mxu0 %vm386_vm2, %v1382_v4 }
 0x77e   :  { %v2370_v10 = vpop.eup %2369  ;;  %2275 = vmatpush3.msra.mxu0 %v384_v5 }
 0x77f   :  { %v1384_v7 = vmul.f32 %v2370_v10, %v2366_v63  ;;  %2284 = vmatprep.subr.mxu0 %v2526_v16 }
 0x781   :  { %2272 = vmatmul.mubr.msk.f32.vlgmr.msra.gmra.mrb[18].mxu1 %vm386_vm2, %v1384_v7 }
 0x782   :  { %2280 = vmatpush3.xpose.msk.msra.mxu1 %vm386_vm2, %v1623_v8  ;;  %2281 = vmatprep.mubr.msk.f32.mxu1 %vm2527_vm1, %v2526_v16 }
 0x783   :  { %2289 = vmatprep.subr.mxu1 %v2526_v16 }
 0x785   :  { %2282 = vmatmul.mubr.msk.f32.vlgmr.msra.gmra.mrb[20].mxu1 %vm386_vm2, %v1621_v12 }
 0x786   :  { %2291 = vmatprep.mubr.msk.f32.mxu1 %vm2527_vm1, %v2526_v16 }
 0x850   :  { %v1457_v13 = vpop.f32.mrb[10].mxu0 }
 0x851   :  { %v2268_v14 = vpop.f32.mrb[11].mxu0  ;;  %2276 = vmatprep.mubr.msk.f32.mxu0 %vm386_vm2, %v1457_v13 }
 0x854   :  { %v1533_v15 = vpop.f32.mrb[18].mxu1 }
 0x855   :  { %v2273_v17 = vpop.f32.mrb[19].mxu1  ;;  %2277 = vmatmul.mubr.msk.f32.vlgmr.msra.gmra.mrb[8].mxu0 %vm386_vm2, %v1533_v15 }
 0x856   :  { %2285 = vmatpush3.xpose.msk.msra.mxu0 %vm386_vm2, %v1701_v11  ;;  %2286 = vmatprep.mubr.msk.f32.mxu0 %vm2527_vm1, %v2526_v16 }
 0x857   :  { %2294 = vmatprep.subr.mxu0 %v2526_v16 }
 0x858   :  { %v1694_v19 = vpop.f32.mrb[20].mxu1 }
 0x859   :  { %v1776_v20 = vmul.f32 0.35355338, %v1694_v19  ;;  %v2283_v21 = vpop.f32.mrb[21].mxu1  ;;  %2287 = vmatmul.mubr.msk.f32.vlgmr.msra.gmra.mrb[12].mxu0 %vm386_vm2, %v1699_v18 }
 0x85a   :  { %2296 = vmatprep.mubr.msk.f32.mxu0 %vm2527_vm1, %v2526_v16 }
 0x85b   :  { %v1778_v23 = vsel %vm386_vm2, %v1776_v20, -inf }
 0x85c   :  { %1779 = vmax.xlane.f32.xlu0 %v1778_v23 }
 0x8e9   :  { %v1780_v27 = vpop.xlane.xlu0 %1779 }
 0x8ea   :  { %v1784_v28 = vsub.f32 %v1776_v20, %v1780_v27 }
 0x8ec   :  { %v1786_v29 = vmul.f32 1.442695, %v1784_v28 }
 0x8ee   :  { %2371 = vpow2.f32 %v1786_v29 }
 0x8f8   :  { %v2372_v30 = vpop.eup %2371 }
 0x8f9   :  { %v1790_v31 = vsel %vm386_vm2, %v2372_v30, 0.0 }
 0x8fa   :  { %1791 = vadd.xlane.f32.xlu0 %v1790_v31 }
 0x92c   :  { %v1772_v32 = vpop.f32.mrb[12].mxu0 }
 0x92d   :  { %v1777_v33 = vmul.f32 0.35355338, %v1772_v32  ;;  %v2288_v34 = vpop.f32.mrb[13].mxu0 }
 0x92f   :  { %v1781_v35 = vsel %vm386_vm2, %v1777_v33, -inf }
 0x930   :  { %1782 = vmax.xlane.f32.xlu1 %v1781_v35 }
 0x941   :  { %1876 = vrot.lane.b32.xlu1 %v2712_v56, %s2530_s4 }
 0x987   :  { %v1792_v41 = vpop.xlane.xlu0 %1791 }
 0x9bd   :  { %v1783_v16 = vpop.xlane.xlu1 %1782 }
 0x9be   :  { %v1785_v36 = vsub.f32 %v1777_v33, %v1783_v16 }
 0x9c0   :  { %v1788_v37 = vmul.f32 1.442695, %v1785_v36 }
 0x9c1   :  { %v1877_v38 = vpop.permute.xlu1 %1876 }
 0x9c2   :  { %2373 = vpow2.f32 %v1788_v37  ;;  %2295 = vmatpush3.msra.mxu0 %v1877_v38 }
 0x9c3   :  { %2375 = vrcp.f32 %v1792_v41  ;;  %2299 = vmatprep.subr.mxu0 %v385_v46 }
 0x9cc   :  { %v2374_v39 = vpop.eup %2373 }
 0x9cd   :  { %v1793_v40 = vsel %vm386_vm2, %v2374_v39, 0.0  ;;  %v2376_v43 = vpop.eup %2375 }
 0x9ce   :  { %1794 = vadd.xlane.f32.xlu0 %v1793_v40  ;;  %v1797_v44 = vmul.f32 %v2376_v43, %v2372_v30 }
 0x9e4   :  { %1800 = vrot.lane.b32.xlu0 %v2714_v57, %s2530_s4 }
 0xa5b   :  { %v1795_v42 = vpop.xlane.xlu0 %1794 }
 0xa5c   :  { %2377 = vrcp.f32 %v1795_v42 }
 0xa5f   :  { %v1801_v56 = vpop.permute.xlu0 %1800 }
 0xa60   :  { %2290 = vmatpush3.msra.mxu1 %v1801_v56 }
 0xa61   :  { %2292 = vmatmul.mubr.msk.f32.vlgmr.msra.gmra.mrb[22].mxu1 %vm386_vm2, %v1797_v44 }
 0xa66   :  { %v2378_v22 = vpop.eup %2377 }
 0xa67   :  { %v1799_v45 = vmul.f32 %v2378_v22, %v2374_v39 }
 0xa69   :  { %2297 = vmatmul.mubr.msk.f32.vlgmr.msra.gmra.mrb[14].mxu0 %vm386_vm2, %v1799_v45 }
 0xa6a   :  { %2300 = vmatpush3.msra.mxu0 %v385_v46 }
 0xb34   :  { %v1872_v25 = vpop.f32.mrb[22].mxu1 }
 0xb35   :  { %v2293_v47 = vpop.f32.mrb[23].mxu1  ;;  %2301 = vmatprep.mubr.msk.f32.mxu0 %vm386_vm2, %v1872_v25 }
 0xb3c   :  { %v1948_v57 = vpop.f32.mrb[14].mxu0 }
 0xb3d   :  { %v2298_v24 = vpop.f32.mrb[15].mxu0  ;;  %2302 = vmatmul.mubr.msk.f32.vlgmr.msra.gmra.mrb[8].mxu0 %vm386_vm2, %v1948_v57 }
 0xc10   :  { %v2303_v49 = vpop.f32.mrb[8].mxu0 }
 0xc11   :  { %v2043_v50 = vadd.f32 %v2303_v49, %v2108_v48  ;;  %v2024_v51 = vpop.f32.mrb[9].mxu0 }
 0xc12   :  { %v2042_v52 = vadd.f32 %v2108_v48, %v2024_v51 }
 0xc13   :  { %2045 = vst.msk [vmem:[#allocation11 + $0x8] sm:$0xff] %vm108_vm0, %v2043_v50 }
 0xc14   :  { %2044 = vst.msk [vmem:[#allocation11] sm:$0xff] %vm108_vm0, %v2042_v52 }
 0xc15   :  { %2500 = shalt.err (!%p2497_p2)
}
 0xc16   :  { %s2501_s26 = scalar_lea.hbm %s2859_s7, 256 }
 0xc17   :  { %p2502_p3 = scmp.ne.s32.totalorder %s2859_s7, %s2501_s26  ;;  %p2505_p4 = scmp.lt.u32.totalorder %s2501_s26, %s2859_s7 }
 0xc19   :  { %p2507_p5 = pnand %p2505_p4, %p2502_p3 }
 0xc1b   :  { %2510 = shalt.err (!%p2507_p5)
}
 0xc1c   :  { %2057 = dma.vmem_to_hbm [thread:$0]  %s2052_s1, 256, %s2859_s7, [#allocation4], %s2521_s13, %s2521_s13, %s2522_s14  }
 0xc1d   :  { %2517 = dma.done.wait [#allocation4], 256  }
 0xc1e   :  { %2518 = vsyncadd [#allocation4], 4294967040 }
 0xc1f   :  { %2061 = vsyncpa [#allocation3], 1 }
 0xc20   :  { %2062 = vsyncpa [#allocation6], 1 }
 0xc21   :  { %2063 = vsyncpa [#allocation9], 1 }
 0xc22   :  { %2064 = vsyncpa [#allocation4], 1 }

</bundles_post_ra>
